<compile_context>
chip_gen: v5e
topology: v5e:2x2
jax: 0.10.0
libtpu: 0.0.40
codegen_flags: <defaults>
</compile_context>

<pallas_src>
import jax
import jax.numpy as jnp
from jax.experimental import pallas as pl
from jax.experimental.pallas import tpu as pltpu


def _round_up(n, m):
    return ((n + m - 1) // m) * m


def emotion_fc2_kernel(x_ref, w_ref, b_ref, o_ref):
    # x_ref: (TM, in_f), w_ref: (in_f, out_p), b_ref: (1, out_p), o_ref: (TM, out_p)
    y = jnp.dot(x_ref[...], w_ref[...], preferred_element_type=jnp.float32)
    y = y + b_ref[...]                       # (1, out_p) broadcasts over rows
    # LeakyReLU(0.2): a single VPU mul + max (cheaper than compare+select).
    o_ref[...] = jnp.maximum(y, 0.2 * y).astype(o_ref.dtype)


def emotion_fc2(x, weight, bias, *, tm=1024, compute_dtype=None,
                allow_xla_fallback=False):
    """
    x:      (B, in_features)               float32
    weight: (out_features, in_features)    PyTorch nn.Linear layout
    bias:   (out_features,)
    returns (B, out_features), same dtype as x.
    """
    B, in_f = x.shape
    out_f = weight.shape[0]
    out_dtype = x.dtype

    # Opt-in escape hatch: at tiny shapes the fixed pallas_call / DMA setup
    # cost dominates, so plain fused XLA is faster there.
    if allow_xla_fallback and B * max(in_f, out_f) < 64 * 128:
        y = x @ weight.T + bias
        return jnp.where(y >= 0, y, 0.2 * y)

    # ---- output lane width ---------------------------------------------
    if out_f < 128 or out_f % 128 == 0:
        out_p = out_f                        # real width: no pad, no post-slice
    else:
        out_p = _round_up(out_f, 128)        # large & misaligned: lane-dense vst

    # ---- row tile ---------------------------------------------------------
    itemsize = jnp.dtype(x.dtype).itemsize
    TM = min(tm, _round_up(B, 8))
    # v7x megacore: make sure the (parallel) batch grid has >= 2 steps.
    if B >= 16 and pl.cdiv(B, TM) < 2:
        TM = _round_up(pl.cdiv(B, 2), 8)
    # Keep double-buffered x/out tiles + resident weight under a v7x-safe
    # budget (64 MiB physical VMEM there, ~32 MiB scoped default).
    vmem_budget = 40 << 20
    resident = (in_f * out_p + out_p) * itemsize
    while TM > 8 and resident + 2 * TM * (in_f + out_p) * itemsize > vmem_budget:
        TM = _round_up(TM // 2, 8)
    # TODO(synk): if the resident weight alone (in_f*out_p*4) exceeds ~16-24 MiB,
    # add an in_features grid axis with a VMEM f32 accumulator instead.

    grid = (pl.cdiv(B, TM),)

    # ---- parameters: transpose once, pad only the (tiny) weight/bias -------
    w_t = weight.T                                     # (in_f, out_f), K-major
    b_p = bias
    if out_p != out_f:
        w_t = jnp.pad(w_t, ((0, 0), (0, out_p - out_f)))
        b_p = jnp.pad(bias, (0, out_p - out_f))
    b2 = b_p.reshape(1, out_p).astype(jnp.float32)

    x_c = x
    if compute_dtype is not None:                      # e.g. jnp.bfloat16
        x_c = x.astype(compute_dtype)
        w_t = w_t.astype(compute_dtype)

    needed = resident + 2 * TM * (in_f + out_p) * itemsize
    vmem_limit = int(min(max(needed + (8 << 20), 32 << 20), 64 << 20))

    cost = pl.CostEstimate(
        flops=2 * B * in_f * out_p,
        bytes_accessed=(B * in_f + in_f * out_p + out_p + B * out_p) * itemsize,
        transcendentals=0,
    )

    # TODO(synk): weight/bias are grid-invariant; pipeline_mode=pl.Buffered(1)
    # would halve their VMEM footprint, skipped here for portability (they are
    # tiny for this module's shapes).
    out = pl.pallas_call(
        emotion_fc2_kernel,
        out_shape=jax.ShapeDtypeStruct((B, out_p), out_dtype),
        grid=grid,
        in_specs=[
            pl.BlockSpec((TM, in_f), lambda i: (i, 0)),     # batch-tiled x (ragged tail ok)
            pl.BlockSpec((in_f, out_p), lambda i: (0, 0)),  # resident weight (K-major)
            pl.BlockSpec((1, out_p), lambda i: (0, 0)),     # resident bias
        ],
        out_specs=pl.BlockSpec((TM, out_p), lambda i: (i, 0)),
        compiler_params=pltpu.CompilerParams(
            dimension_semantics=("parallel",),               # 2 TCs on v7x
            vmem_limit_bytes=vmem_limit,
        ),
        cost_estimate=cost,
    )(x_c, w_t, b2)

    return out if out_p == out_f else out[:, :out_f]


if __name__ == "__main__":
    def ref_forward(x, w, b):
        y = x @ w.T + b
        return jnp.where(y >= 0, y, 0.2 * y)

    def make_inputs(key, batch, in_f, out_f):
        kx, kw, kb = jax.random.split(key, 3)
        x = jax.random.normal(kx, (batch, in_f), dtype=jnp.float32)
        bound = 1.0 / (in_f ** 0.5)   # mimics nn.Linear's default init range
        w = jax.random.uniform(kw, (out_f, in_f), minval=-bound, maxval=bound,
                               dtype=jnp.float32)
        b = jax.random.uniform(kb, (out_f,), minval=-bound, maxval=bound,
                               dtype=jnp.float32)
        return x, w, b

    key = jax.random.PRNGKey(0)
    k1, k2 = jax.random.split(key)

    # 1) Module-typical small shapes (B=8, in=32, out=16): single-step grid.
    x1, w1, b1 = make_inputs(k1, 8, 32, 16)
    out1 = jax.block_until_ready(emotion_fc2(x1, w1, b1))
    assert out1.shape == (8, 16)
    assert jnp.allclose(out1, ref_forward(x1, w1, b1), atol=1e-5, rtol=1e-5)

    # 2) Ragged batch: B=200 with TM=64 -> 4 grid steps, masked final block,
    #    no host-side padding of x and no output row slice.
    x2, w2, b2 = make_inputs(k2, 200, 32, 16)
    out2 = jax.block_until_ready(emotion_fc2(x2, w2, b2, tm=64))
    assert out2.shape == (200, 16)
    assert jnp.allclose(out2, ref_forward(x2, w2, b2), atol=1e-5, rtol=1e-5)

    # 3) Opt-in fused-XLA fallback for tiny shapes (same semantics).
    out3 = jax.block_until_ready(emotion_fc2(x1, w1, b1, allow_xla_fallback=True))
    assert jnp.allclose(out3, ref_forward(x1, w1, b1), atol=1e-5, rtol=1e-5)

    print("KERNEL_OK")
</pallas_src>

<mosaic_0001>
module attributes {stable_mosaic.version = 11 : i64} {
  func.func @emotion_fc2_kernel(%arg0: i32, %arg1: memref<8x32xf32, #tpu.memory_space<vmem>>, %arg2: memref<32x16xf32, #tpu.memory_space<vmem>>, %arg3: memref<1x16xf32, #tpu.memory_space<vmem>>, %arg4: memref<8x16xf32, #tpu.memory_space<vmem>>) attributes {dimension_semantics = [#tpu.dimension_semantics<parallel>], iteration_bounds = array<i64: 1>, scalar_prefetch = 0 : i64, scratch_operands = 0 : i64, tpu.core_type = #tpu.core_type<tc>, window_params = [{transform_indices = @transform_0, window_bounds = array<i64: 8, 32>}, {pipeline_mode = #tpu.pipeline_mode<synchronous>, transform_indices = @transform_1, window_bounds = array<i64: 32, 16>}, {pipeline_mode = #tpu.pipeline_mode<synchronous>, transform_indices = @transform_2, window_bounds = array<i64: 1, 16>}, {transform_indices = @transform_3, window_bounds = array<i64: 8, 16>}]} {
    %c0 = arith.constant 0 : index
    %c0_0 = arith.constant 0 : index
    %0 = vector.load %arg1[%c0, %c0_0] : memref<8x32xf32, #tpu.memory_space<vmem>>, vector<8x32xf32>
    %c0_1 = arith.constant 0 : index
    %c0_2 = arith.constant 0 : index
    %1 = vector.load %arg2[%c0_1, %c0_2] : memref<32x16xf32, #tpu.memory_space<vmem>>, vector<32x16xf32>
    %cst = arith.constant dense<0.000000e+00> : vector<8x16xf32>
    %2 = tpu.matmul %0, %1, %cst {dimension_numbers = #tpu.dot_dimension_numbers<[1], [0], [0], [1], [0, 0, 1, 1], [], []>} : vector<8x32xf32>, vector<32x16xf32>, vector<8x16xf32> -> vector<8x16xf32>
    %c0_3 = arith.constant 0 : index
    %c0_4 = arith.constant 0 : index
    %3 = vector.load %arg3[%c0_3, %c0_4] : memref<1x16xf32, #tpu.memory_space<vmem>>, vector<1x16xf32>
    %4 = vector.broadcast %3 : vector<1x16xf32> to vector<8x16xf32>
    %5 = arith.addf %2, %4 : vector<8x16xf32>
    %cst_5 = arith.constant 2.000000e-01 : f32
    %6 = vector.broadcast %cst_5 : f32 to vector<8x16xf32>
    %7 = arith.mulf %6, %5 : vector<8x16xf32>
    %8 = arith.maximumf %5, %7 : vector<8x16xf32>
    %c0_6 = arith.constant 0 : index
    %c0_7 = arith.constant 0 : index
    %9 = vector.load %arg4[%c0_6, %c0_7] : memref<8x16xf32, #tpu.memory_space<vmem>>, vector<8x16xf32>
    tpu.vector_store %arg4[%c0_6, %c0_7], %8 {strides = array<i32>} : memref<8x16xf32, #tpu.memory_space<vmem>>, vector<8x16xf32>,
    return
  }
  func.func @transform_0(%arg0: i32) -> (i32, i32) {
    %c0_i32 = arith.constant 0 : i32
    %c0_i32_0 = arith.constant 0 : i32
    return %arg0, %c0_i32 : i32, i32
  }
  func.func @transform_1(%arg0: i32) -> (i32, i32) {
    %c0_i32 = arith.constant 0 : i32
    %c0_i32_0 = arith.constant 0 : i32
    %c0_i32_1 = arith.constant 0 : i32
    return %c0_i32, %c0_i32_0 : i32, i32
  }
  func.func @transform_2(%arg0: i32) -> (i32, i32) {
    %c0_i32 = arith.constant 0 : i32
    %c0_i32_0 = arith.constant 0 : i32
    %c0_i32_1 = arith.constant 0 : i32
    return %c0_i32, %c0_i32_0 : i32, i32
  }
  func.func @transform_3(%arg0: i32) -> (i32, i32) {
    %c0_i32 = arith.constant 0 : i32
    %c0_i32_0 = arith.constant 0 : i32
    return %arg0, %c0_i32 : i32, i32
  }
}

</mosaic_0001>

<bundles_post_ra>
// kernel: tpu_custom_call.1
= control target key start
LH: loop header
LB: loop body
LE: loop exit
PB: predicated region body
PF: predicated region fallthrough
CT: control target
= control target key end

     0   :  { %s139_s0 = inlined_call_operand.vmem [shape: f32[8,32], index: 0, kind: input, shape index: {}]   ;;  %s140_s1 = inlined_call_operand.vmem [shape: f32[32,16], index: 1, kind: input, shape index: {}]   ;;  %s141_s2 = inlined_call_operand.vmem [shape: f32[1,16], index: 2, kind: input, shape index: {}]   ;;  %s142_s3 = inlined_call_operand.hbm [shape: f32[8,16], index: 3, kind: output, shape index: {}]  }
   0x1   :  { %v19_v0 = vld [vmem:[%s140_s1 + $0x18] sm:$0xff]  ;;  %v18_v1 = vld [vmem:[%s140_s1 + $0x10] sm:$0xff]  ;;  %v17_v2 = vld [vmem:[%s140_s1 + $0x8] sm:$0xff] }
   0x2   :  { %40 = vmatpush.msra.mxu0 %v19_v0 }
   0x3   :  { %8 = vsyncpa [#allocation3], 0  ;;  %v16_v3 = vld [vmem:[%s140_s1] sm:$0xff]  ;;  %vm24_vm0 = vcmask 261120   ;;  %s97_s24 = smov [#allocation2]   ;;  %s59_s1 = sshll.u32 %s142_s3, 4  ;;  %s60_s1 = int_to_ptr.hbm [resolvable:$true] %s59_s1 }
   0x4   :  { %41 = vmatpush.msra.mxu0 %v18_v1  ;;  %v15_v4 = vld [vmem:[%s139_s0] sm:$0xff]  ;;  %s57_s25 = sshll.u32 %s97_s24, 4  ;;  %vm50_vm1 = vcmask 130048   ;;  %s58_s25 = int_to_ptr.vmem [resolvable:$true] %s57_s25 }
   0x5   :  { %v70_v5 = vld [vmem:[%s141_s2] ss:$0 sm:$0xff] }
   0x6   :  { %42 = vmatpush.msra.mxu0 %v17_v2 }
   0x8   :  { %43 = vmatpush.msra.mxu0 %v16_v3 }
   0x9   :  { %68 = vmatmul.msk.f32.vlgmr.msra.gmra.mxu0 %vm24_vm0, %v15_v4 }
  0x86   :  { %v45_v6 = vpop.f32.mrf.mxu0 }
  0x87   :  { %v46_v7 = vadd.f32 %v70_v5, %v45_v6 }
  0x89   :  { %v48_v8 = vmul.f32 0.2, %v46_v7 }
  0x8b   :  { %v49_v9 = vmax.f32 %v46_v7, %v48_v8 }
  0x8d   :  { %51 = vst.msk [vmem:[#allocation2] sm:$0xff] %vm50_vm1, %v49_v9 }
  0x8e   :  { %62 = dma.vmem_to_hbm [thread:$0]  %s58_s25, 128, %s60_s1, [#allocation3]  }
  0x8f   :  { %95 = dma.done.wait [#allocation3], 128  }
  0x90   :  { %96 = vsyncadd [#allocation3], 4294967168 }
  0x91   :  { %67 = vsyncpa [#allocation3], 1 }

</bundles_post_ra>
